<compile_context>
chip_gen: v6e
topology: v6e:2x2x1
jax: 0.10.0
libtpu: 0.0.40
codegen_flags: <defaults>
</compile_context>

<pallas_src>
import jax
import jax.numpy as jnp
from jax.experimental import pallas as pl
from jax.experimental.pallas import tpu as pltpu


def cse_scale_kernel(x_ref, g_ref, o_ref):
    # x_ref: (1, C, T) input tile, g_ref: (1, C, 1) per-batch channel gate.
    # Single fused multiply; the (C, 1) gate broadcasts across the lane axis.
    o_ref[0] = x_ref[0] * g_ref[0]


def _choose_hw_tile(hw: int) -> int:
    """Largest lane-dense tile (multiple of 128, <= 2048) dividing HW, else full HW."""
    if hw % 128 == 0:
        for t in (2048, 1024, 512, 256, 128):
            if hw % t == 0:
                return t
    return hw  # full extent is always a legal block size


def cse_forward(x, w1, b1, w2, b2):
    """x: (N, C, H, W) float32.  w1: (Cr, C), b1: (Cr,), w2: (C, Cr), b2: (C,)."""
    N, C, H, W = x.shape
    HW = H * W
    xf = x.reshape(N, C, HW)

    # ---- squeeze path in plain JAX (tiny; keeps the kernel streaming-only) ----
    z = jnp.mean(xf.astype(jnp.float32), axis=-1)             # (N, C)
    h = jax.nn.relu(z @ w1.T + b1)                            # (N, Cr)
    g = jax.nn.sigmoid(h @ w2.T + b2)                         # (N, C)
    gate = g.astype(x.dtype).reshape(N, C, 1)                 # (N, C, 1)

    # ---- excitation (broadcast multiply) as a tiled Pallas streaming kernel ----
    T = _choose_hw_tile(HW)
    grid = (N, HW // T)

    out = pl.pallas_call(
        cse_scale_kernel,
        out_shape=jax.ShapeDtypeStruct((N, C, HW), x.dtype),
        grid=grid,
        in_specs=[
            pl.BlockSpec((1, C, T), lambda n, t: (n, 0, t)),   # x tile
            pl.BlockSpec((1, C, 1), lambda n, t: (n, 0, 0)),   # channel gate (resident)
        ],
        out_specs=pl.BlockSpec((1, C, T), lambda n, t: (n, 0, t)),
        compiler_params=pltpu.CompilerParams(
            dimension_semantics=("parallel", "parallel")),
    )(xf, gate)

    return out.reshape(N, C, H, W)


def cse_reference(x, w1, b1, w2, b2):
    """Pure-JAX reference mirroring the PyTorch forward."""
    N, C, H, W = x.shape
    z = x.reshape(N, C, H * W).mean(-1)                       # (N, C)
    h = jax.nn.relu(z @ w1.T + b1)                            # (N, Cr)
    g = jax.nn.sigmoid(h @ w2.T + b2)                         # (N, C)
    return x * g[:, :, None, None]


if __name__ == "__main__":
    N, C, H, W = 2, 4, 16, 16
    r = 2
    Cr = C // r

    key = jax.random.PRNGKey(0)
    kx, k1, k2, k3, k4 = jax.random.split(key, 5)

    x = jax.random.normal(kx, (N, C, H, W), dtype=jnp.float32)

    # Parameters matching nn.Linear(in_ch, in_ch//r) and nn.Linear(in_ch//r, in_ch).
    w1 = jax.random.normal(k1, (Cr, C), dtype=jnp.float32) * 0.5   # linear_1.weight
    b1 = jax.random.normal(k2, (Cr,), dtype=jnp.float32) * 0.1     # linear_1.bias
    w2 = jax.random.normal(k3, (C, Cr), dtype=jnp.float32) * 0.5   # linear_2.weight
    b2 = jax.random.normal(k4, (C,), dtype=jnp.float32) * 0.1      # linear_2.bias

    out = cse_forward(x, w1, b1, w2, b2)
    out = jax.block_until_ready(out)

    ref = cse_reference(x, w1, b1, w2, b2)
    assert out.shape == (N, C, H, W)
    assert jnp.allclose(out, ref, atol=1e-5, rtol=1e-5), "mismatch vs reference"

    print("KERNEL_OK")
</pallas_src>

<mosaic_0001>
module attributes {stable_mosaic.version = 11 : i64} {
  func.func @cse_scale_kernel(%arg0: i32, %arg1: i32, %arg2: memref<1x4x256xf32, #tpu.memory_space<vmem>>, %arg3: memref<1x4x1xf32, #tpu.memory_space<vmem>>, %arg4: memref<1x4x256xf32, #tpu.memory_space<vmem>>) attributes {dimension_semantics = [#tpu.dimension_semantics<parallel>, #tpu.dimension_semantics<parallel>], iteration_bounds = array<i64: 2, 1>, scalar_prefetch = 0 : i64, scratch_operands = 0 : i64, tpu.core_type = #tpu.core_type<tc>, window_params = [{transform_indices = @transform_0, window_bounds = array<i64: 1, 4, 256>}, {transform_indices = @transform_1, window_bounds = array<i64: 1, 4, 1>}, {transform_indices = @transform_2, window_bounds = array<i64: 1, 4, 256>}]} {
    %c0 = arith.constant 0 : index
    %c0_0 = arith.constant 0 : index
    %c0_1 = arith.constant 0 : index
    %0 = vector.load %arg2[%c0, %c0_0, %c0_1] : memref<1x4x256xf32, #tpu.memory_space<vmem>>, vector<1x4x256xf32>
    %1 = vector.shape_cast %0 : vector<1x4x256xf32> to vector<4x256xf32>
    %c0_2 = arith.constant 0 : index
    %c0_3 = arith.constant 0 : index
    %c0_4 = arith.constant 0 : index
    %2 = vector.load %arg3[%c0_2, %c0_3, %c0_4] : memref<1x4x1xf32, #tpu.memory_space<vmem>>, vector<1x4x1xf32>
    %3 = vector.shape_cast %2 : vector<1x4x1xf32> to vector<4x1xf32>
    %4 = vector.broadcast %3 : vector<4x1xf32> to vector<4x256xf32>
    %5 = arith.mulf %1, %4 : vector<4x256xf32>
    %c0_5 = arith.constant 0 : index
    %c0_6 = arith.constant 0 : index
    %c0_7 = arith.constant 0 : index
    %6 = vector.load %arg4[%c0_5, %c0_6, %c0_7] : memref<1x4x256xf32, #tpu.memory_space<vmem>>, vector<1x4x256xf32>
    %7 = vector.shape_cast %6 : vector<1x4x256xf32> to vector<4x256xf32>
    %8 = vector.shape_cast %5 : vector<4x256xf32> to vector<1x4x256xf32>
    tpu.vector_store %arg4[%c0_5, %c0_6, %c0_7], %8 {strides = array<i32>} : memref<1x4x256xf32, #tpu.memory_space<vmem>>, vector<1x4x256xf32>,
    return
  }
  func.func @transform_0(%arg0: i32, %arg1: i32) -> (i32, i32, i32) {
    %c0_i32 = arith.constant 0 : i32
    %c0_i32_0 = arith.constant 0 : i32
    return %arg0, %c0_i32, %arg1 : i32, i32, i32
  }
  func.func @transform_1(%arg0: i32, %arg1: i32) -> (i32, i32, i32) {
    %c0_i32 = arith.constant 0 : i32
    %c0_i32_0 = arith.constant 0 : i32
    %c0_i32_1 = arith.constant 0 : i32
    return %arg0, %c0_i32, %c0_i32_0 : i32, i32, i32
  }
  func.func @transform_2(%arg0: i32, %arg1: i32) -> (i32, i32, i32) {
    %c0_i32 = arith.constant 0 : i32
    %c0_i32_0 = arith.constant 0 : i32
    return %arg0, %c0_i32, %arg1 : i32, i32, i32
  }
}

</mosaic_0001>

<bundles_post_ra>
// kernel: tpu_custom_call.1
= control target key start
LH: loop header
LB: loop body
LE: loop exit
PB: predicated region body
PF: predicated region fallthrough
CT: control target
= control target key end

     0   :  { %7 = vsyncpa [#allocation3], 0  ;;  %s677_s0 = inlined_call_operand.hbm [shape: f32[2,4,256], index: 0, kind: input, shape index: {}]   ;;  %s678_s1 = inlined_call_operand.vmem [shape: f32[2,4,1], index: 1, kind: input, shape index: {}]   ;;  %s679_s2 = inlined_call_operand.hbm [shape: f32[2,4,256], index: 2, kind: output, shape index: {}]  }
   0x1   :  { %9 = vsyncpa [#allocation3 + $0x1], 0 }
   0x2   :  { %10 = vsyncpa [#allocation4], 0 }
   0x3   :  { %12 = vsyncpa [#allocation4 + $0x1], 0  ;;  %s538_s9 = smov 0   ;;  %s540_s10 = smov 0  }
   0x4   :  { %s542_s11 = smov 0   ;;  %s544_s12 = smov 0  }
   0x5   :  { %s546_s13 = smov 0   ;;  %s548_s14 = smov 0  }
   0x6 LB: > { %s326_s15 = sadd.s32 4294967295, %s517_s14   ;;  %s327_s16 = sadd.s32 4294967294, %s517_s14   ;;  %s517_s14 = sphi %s548_s14, %s18_s14   ;;  %s513_s13 = sphi %s546_s13, %s691_s13   ;;  %s509_s12 = sphi %s544_s12, %s690_s12   ;;  %s505_s11 = sphi %s542_s11, %s689_s11   ;;  %s501_s10 = sphi %s540_s10, %s688_s10   ;;  %s497_s9 = sphi %s538_s9, %s687_s9  }
   0x7   : > { %s30_s17 = sadd.s32 1, %s513_s13  ;;  %s39_s18 = sadd.s32 1, %s505_s11 }
   0x8   : > { %p32_p0 = scmp.ge.s32.totalorder %s30_s17, 2  ;;  %p46_p1 = scmp.ne.s32.totalorder %s505_s11, %s501_s10 }
   0x9   : > { %p47_p2 = scmp.eq.s32.totalorder %s517_s14, 0  ;;  %p52_p3 = scmp.ne.s32.totalorder %s501_s10, %s497_s9 }
   0xa   : > { %s693_s17 = smov (%p32_p0, %s30_s17), 0  ;;  %p53_p5 = scmp.eq.s32.totalorder %s326_s15, 0 }
   0xb   : > { %p579_p4 = por %p47_p2, %p46_p1  ;;  %s34_s20 = ssub.s32 %s513_s13, %s693_s17 }
   0xc   : > { %p104_p6 = scmp.eq.s32.totalorder %s326_s15, 1  ;;  %p37_p7 = scmp.eq.s32.totalorder %s34_s20, 0 }
   0xd   : > { %p585_p8 = por %p53_p5, %p52_p3  ;;  %p110_p10 = scmp.eq.s32.totalorder %s327_s16, 1 }
   0xe   : > { %p589_p9 = por %p104_p6, %p46_p1  ;;  %p356_p13 = scmp.lt.s32.totalorder %s517_s14, 2 }
   0xf   : > { %s594_s23 = scalar_select %p37_p7, %s505_s11, %s39_s18  }
  0x10   : > { %p596_p11 = por %p110_p10, %p52_p3  ;;  %s130_s25 = sand.u32 1, %s505_s11  }
  0x11   : > { %s330_s26 = sshll.u32 %s130_s25, 3  ;;  %s342_s27 = sshll.u32 %s513_s13, 7 }
  0x12   : > { %s683_s24 = scalar_select %p596_p11, 1, 0 }
  0x13   : > { %s142_s30 = scalar_lea.hbm %s677_s0, %s342_s27  ;;  %s134_s3 = scalar_lea.vmem [#allocation2], %s330_s26 }
  0x14   : > { %s144_s4 = sshll.u32 %s134_s3, 4  ;;  %p609_p0 = pnand %p356_p13, %p579_p4  ;;  %s145_s4 = int_to_ptr.vmem [resolvable:$true] %s144_s4 }
  0x15   : > { %p333_p1 = scmp.ge.s32.totalorder %s517_s14, 1  ;;  %p156_p2 = scmp.lt.s32.totalorder %s517_s14, 3 }
  0x16   : > { %s131_s6 = scalar_lea.sflag [#allocation3], %s130_s25  ;;  %p411_p3 = pneg %p609_p0 }
  0x17   : > { %s422_s7 = scalar_lea.vmem %s145_s4, 128  ;;  %s519_s8 = smov [#allocation2]  }
  0x18   : > { %p423_p5 = scmp.ne.s32.totalorder %s145_s4, %s422_s7  ;;  %s427_s15 = sshll.u32 %s519_s8, 4  ;;  %s428_s15 = int_to_ptr.vmem [resolvable:$false] %s427_s15 }
  0x19   : > { %s429_s16 = scalar_lea.vmem %s428_s15, 256  ;;  %p430_p10 = scmp.lt.s32.totalorder %s145_s4, %s428_s15 }
  0x1a   : > { %p425_p6 = pnand %p423_p5, %p411_p3  ;;  %p431_p12 = scmp.lt.s32.totalorder %s429_s16, %s422_s7 }
  0x1c   : > { %p426_p7 = pneg %p425_p6  ;;  %p432_p4 = por %p431_p12, %p430_p10 }
  0x1e   : > { %p433_p13 = pnand %p432_p4, %p426_p7 }
  0x20   : > { %436 = shalt.err (!%p433_p13)
}
  0x21   : > { %351 = dma.hbm_to_vmem [thread:$0]  (!%p609_p0), %s142_s30, 128, %s145_s4, %s131_s6  }
  0x22   : > { %p157_p11 = pnand %p333_p1, %p156_p2 }
  0x23   : > { %s624_s18 = sand.u32 (!%p157_p11), 1, %s501_s10  }
  0x24   : > { %160 = sbr.rel (%p157_p11) target bundleno = 190 (0xbe), region = 28  ;;  %s334_s19 = sshll.u32 (!%p157_p11), %s624_s18, 3 }
  0x25   : > { %s163_s20 = scalar_lea.sflag (!%p157_p11), [#allocation3], %s624_s18  ;;  %s166_s25 = scalar_lea.vmem (!%p157_p11), [#allocation2], %s334_s19 }
  0x29   : > { %488 = dma.done.wait (%p585_p8), %s163_s20, 128  }
  0x2a   : > { %490 = vsyncadd (%p585_p8), %s163_s20, 4294967168  ;;  %p192_p12 = scmp.lt.s32.totalorder %s509_s12, 1  ;;  %v520_v0 = vmov 0   ;;  %v521_v2 = vmov 839922192   ;;  %v206_v4 = vlaneseq  ;;  %v197_v9 = vld [vmem:[%s166_s25] sm:$0xff] }
  0x2b   : > { %408 = vset.pattern.permute.xlu0 %v520_v0  ;;  %v204_v3 = vunpack.c.l.s4 %v521_v2  ;;  %s343_s21 = sshll.u32 %s509_s12, 7  ;;  %s190_s3 = scalar_lea.vmem [#allocation5], %s334_s19 }
  0x2c   : > { %s193_s26 = scalar_select %p192_p12, %s509_s12, 1  ;;  %v207_v6 = vshrl.u32 %v206_v4, 7 }
  0x2d   : > { %v205_v5 = vunpack.c.0.s8 %v204_v3  ;;  %s230_s4 = sshll.u32 %s190_s3, 4  ;;  %s228_s7 = scalar_lea.hbm %s679_s2, %s343_s21  ;;  %s231_s4 = int_to_ptr.vmem [resolvable:$true] %s230_s4 }
  0x2e   : > { %s336_s27 = sshll.u32 %s193_s26, 2  ;;  %s214_s8 = scalar_lea.sflag [#allocation4], %s624_s18 }
  0x2f   : > { %s195_s30 = scalar_lea.vmem %s678_s1, %s336_s27  ;;  %v208_v7 = vsub.s32 %v205_v5, %v207_v6  ;;  %s437_s15 = scalar_lea.vmem %s231_s4, 128 }
  0x30   : > { %v198_v1 = vld [vmem:[%s195_s30] sm:$0xf]  ;;  %p438_p8 = scmp.ne.s32.totalorder %s231_s4, %s437_s15  ;;  %s522_s16 = smov [#allocation5]  }
  0x31   : > { %201 = vperm.xlu0 %408, %v198_v1   ;;  %s441_s20 = sshll.u32 %s522_s16, 4  ;;  %s442_s20 = int_to_ptr.vmem [resolvable:$false] %s441_s20 }
  0x32   : > { %p439_p11 = pnand %p438_p8, %p589_p9  ;;  %s443_s12 = scalar_lea.vmem %s442_s20, 256 }
  0x33   : > { %p444_p1 = scmp.lt.s32.totalorder %s231_s4, %s442_s20  ;;  %p445_p2 = scmp.lt.s32.totalorder %s443_s12, %s437_s15 }
  0x34   : > { %p440_p0 = pneg %p439_p11 }
  0x35   : > { %p446_p3 = por %p445_p2, %p444_p1 }
  0x37   : > { %p447_p5 = pnand %p446_p3, %p440_p0 }
  0xac   : > { %v202_v8 = vpop.permute.xlu0 %201 }
  0xad   : > { %v209_v10 = vrot.slane %v202_v8, %v208_v7 }
  0xaf   : > { %v211_v11 = vmul.f32 %v209_v10, %v197_v9 }
  0xb1   : > { %212 = vst [vmem:[%s190_s3] sm:$0xff] %v211_v11 }
  0xb2   : > { %450 = shalt.err (!%p447_p5)
}
  0xb3   : > { %s451_s19 = scalar_lea.hbm %s228_s7, 128  ;;  %s455_s26 = scalar_lea.hbm %s679_s2, 256 }
  0xb4   : > { %p452_p6 = scmp.ne.s32.totalorder %s228_s7, %s451_s19  ;;  %p456_p4 = scmp.lt.s32.totalorder %s228_s7, %s679_s2 }
  0xb5   : > { %p457_p13 = scmp.lt.s32.totalorder %s455_s26, %s451_s19 }
  0xb6   : > { %p453_p7 = pnand %p452_p6, %p589_p9 }
  0xb7   : > { %p458_p12 = por %p457_p13, %p456_p4 }
  0xb8   : > { %p454_p10 = pneg %p453_p7 }
  0xba   : > { %p459_p8 = pnand %p458_p12, %p454_p10 }
  0xbc   : > { %462 = shalt.err (!%p459_p8)
}
  0xbd   : > { %346 = dma.vmem_to_hbm [thread:$0]  (%p589_p9), %s231_s4, 128, %s228_s7, %s214_s8  }
  0xbe PF: > { %s242_s29 = sand.u32 1, %s497_s9   ;;  %p685_p11 = scmp.ne.s32.totalorder %s683_s24, 0 }
  0xbf   : > { %p686_p0 = scmp.ge.s32.totalorder %s517_s14, 2  ;;  %s243_s30 = scalar_lea.sflag [#allocation4], %s242_s29 }
  0xc1   : > { %p353_p1 = pnand %p686_p0, %p685_p11 }
  0xc3   : > { %p354_p2 = pneg %p353_p1 }
  0xc5   : > { %492 = dma.done.wait (%p354_p2), %s243_s30, 128  }
  0xc6   : > { %494 = vsyncadd (%p354_p2), %s243_s30, 4294967168  ;;  %s18_s14 = sadd.s32 1, %s517_s14   ;;  %s687_s9 = smov %s501_s10 }
  0xc7   : > { %p15_p3 = scmp.ge.s32.totalorder %s18_s14, 4   ;;  %s688_s10 = smov %s505_s11 }
  0xc8   : > { %s689_s11 = smov %s594_s23  ;;  %s690_s12 = smov %s513_s13 }
  0xc9   : > { %s691_s13 = smov %s693_s17  ;;  %17 = sbr.rel (!%p15_p3) target bundleno = 6 (0x6), region = 76 }
  0xce   :  { %248 = vsyncpa [#allocation3], 1 }
  0xcf   :  { %250 = vsyncpa [#allocation3 + $0x1], 1 }
  0xd0   :  { %251 = vsyncpa [#allocation4], 1 }
  0xd1   :  { %253 = vsyncpa [#allocation4 + $0x1], 1 }

</bundles_post_ra>
